<compile_context>
chip_gen: v7x
topology: tpu7x:2x2x1
jax: 0.10.0
libtpu: 0.0.40
codegen_flags: <defaults>
</compile_context>

<pallas_src>
import numpy as np
import jax
import jax.numpy as jnp
from jax import lax
from jax.experimental import pallas as pl
from jax.experimental.pallas import tpu as pltpu

_LANES = 128
_SUBLANES = 8
_EPS = 1e-10


def _belief_ppg_kernel(probs_ref, transT_ref, prior_ref, epsvec_ref, w_ref,
                       out_ref, stats_ref):
    """Unrolled sum-product recurrence + lane-dense expectation matmul.

    probs_ref : (T, dp)   raw bin probabilities (zero-padded lanes)
    transT_ref: (dp, dp)  transition_prior transposed (zero-padded rows/cols)
    prior_ref : (1, dp)   state prior (zero-padded lanes)
    epsvec_ref: (1, dp)   1e-10 on real lanes, 0 on padded lanes
    w_ref     : (dp, 128) column 0 = bins, column 1 = bins^2, rest 0
    out_ref   : (T, dp)   contextualized probabilities
    stats_ref : (T, 128)  column 0 = E_x, column 1 = E_x2
    """
    T = probs_ref.shape[0]

    probs_all = probs_ref[...]                       # one full-tile load (T, dp)
    transT = transT_ref[...]                         # loaded once, reused each step
    eps_vec = epsvec_ref[...]                        # (1, dp)

    u = prior_ref[...]                               # (1, dp) unnormalized state
    c = jnp.sum(u, axis=1, keepdims=True)            # (1, 1)  running sum (== 1.0)

    rows = []
    for t in range(T):                               # fully unrolled, static indices
        # p_prior = transition_prior @ state, as a row-vector MXU matmul.
        v = jnp.dot(u, transT, preferred_element_type=jnp.float32)   # (1, dp)
        # Unnormalized update; eps scaled by the running sum keeps exact semantics.
        u = v * probs_all[t:t + 1, :] + c * eps_vec                  # (1, dp) VPU
        # Cross-lane reduce is off the matmul chain (only feeds eps & the output).
        c = jnp.sum(u, axis=1, keepdims=True)                        # (1, 1)
        rows.append(u / c)                           # exact normalization, off-chain

    out = jnp.concatenate(rows, axis=0)              # (T, dp) assembled in vregs
    out_ref[...] = out                               # single full-tile lane-dense store

    # E_x / E_x2 via one MXU matmul -> lane-dense (T, 128) output.
    stats_ref[...] = jnp.dot(out, w_ref[...], preferred_element_type=jnp.float32)


def make_belief_ppg_params(dim):
    """Deterministic parameter construction mirroring BeliefPPG.__init__ / fit_layer."""
    # bins: midpoints of [-3/dim] + linspace(0,1,dim-1) + [1+3/dim]
    edges = np.array([-3.0 / dim] + list(np.linspace(0.0, 1.0, dim - 1)) + [1.0 + 3.0 / dim])
    bins = (edges[1:] + edges[:-1]) / 2.0                               # (dim,)

    # state prior: uniform (as in __init__)
    state_prior = np.ones(dim, dtype=np.float32) / dim

    # transition prior: __init__ sets zeros; a zero matrix degenerates the
    # recurrence, so we deterministically build a Laplace-like banded prior
    # analogous to what fit_layer would produce.
    i = np.arange(dim)[:, None]
    j = np.arange(dim)[None, :]
    transition_prior = np.exp(-np.abs(i - j) / 3.0).astype(np.float32)  # (dim, dim)

    return (jnp.asarray(bins, dtype=jnp.float32),
            jnp.asarray(state_prior, dtype=jnp.float32),
            jnp.asarray(transition_prior, dtype=jnp.float32))


def belief_ppg_forward(probs, preds, bins, state_prior, transition_prior):
    """Pallas implementation of BeliefPPG.forward(probs, preds) with method='sumprod'.

    Returns (E_x, uncert, contextualized_probs); `preds` is unused by the
    sumprod path, matching the PyTorch module.
    """
    del preds  # unused by forward_sumprod (matches reference)
    T, dim = probs.shape
    f32 = jnp.float32

    # Pad lanes to a multiple of 128 and rows to a multiple of 8 (full vregs,
    # unmasked loads/stores, one clean MXU pass for the matvec).
    dp = max(_LANES, ((dim + _LANES - 1) // _LANES) * _LANES)
    Tp = ((T + _SUBLANES - 1) // _SUBLANES) * _SUBLANES

    probs_pad = jnp.zeros((Tp, dp), f32).at[:T, :dim].set(probs.astype(f32))
    prior_pad = jnp.zeros((1, dp), f32).at[0, :dim].set(state_prior.astype(f32))
    transT_pad = jnp.zeros((dp, dp), f32).at[:dim, :dim].set(
        transition_prior.T.astype(f32))          # state_row @ transT == trans @ state
    eps_vec = jnp.zeros((1, dp), f32).at[0, :dim].set(_EPS)
    bins_pad = jnp.zeros((dp,), f32).at[:dim].set(bins.astype(f32))
    w = (jnp.zeros((dp, _LANES), f32)
         .at[:, 0].set(bins_pad)
         .at[:, 1].set(bins_pad * bins_pad))

    vmem_spec = pl.BlockSpec(memory_space=pltpu.MemorySpace.VMEM)
    out_pad, stats = pl.pallas_call(
        _belief_ppg_kernel,
        out_shape=(
            jax.ShapeDtypeStruct((Tp, dp), f32),
            jax.ShapeDtypeStruct((Tp, _LANES), f32),
        ),
        in_specs=[vmem_spec] * 5,
        out_specs=(vmem_spec, vmem_spec),
    )(probs_pad, transT_pad, prior_pad, eps_vec, w)

    out = out_pad[:T, :dim]
    ex = stats[:T, 0]
    ex2 = stats[:T, 1]
    unc = jnp.sqrt(jnp.maximum(ex2 - ex * ex, 0.0))   # clamp fp cancellation
    return ex, unc, out


def _reference_forward(probs, bins, state_prior, transition_prior):
    """Pure-JAX reference of forward_sumprod for validation."""
    def step(state, p):
        p_prior = transition_prior @ state
        p_new = p_prior * p + 1e-10
        new_state = p_new / jnp.sum(p_new)
        return new_state, new_state

    _, out = lax.scan(step, state_prior, probs)
    ex = jnp.sum(out * bins[None, :], axis=1)
    ex2 = jnp.sum(out * bins[None, :] ** 2, axis=1)
    unc = jnp.sqrt(ex2 - ex ** 2)
    return ex, unc, out


if __name__ == "__main__":
    T, dim = 8, 64  # n_samples (consecutive windows), n_bins

    key = jax.random.PRNGKey(0)
    logits = jax.random.normal(key, (T, dim), dtype=jnp.float32)
    probs = jax.nn.softmax(logits, axis=-1)          # raw instantaneous bin probabilities
    preds = jnp.zeros((T,), dtype=jnp.float32)       # ignored by sumprod path

    bins, state_prior, transition_prior = make_belief_ppg_params(dim)

    ex, unc, ctx_probs = belief_ppg_forward(probs, preds, bins, state_prior, transition_prior)
    jax.block_until_ready((ex, unc, ctx_probs))

    # Validate against the pure-JAX reference of the PyTorch semantics.
    ex_r, unc_r, out_r = _reference_forward(probs, bins, state_prior, transition_prior)
    assert ex.shape == (T,) and unc.shape == (T,) and ctx_probs.shape == (T, dim)
    np.testing.assert_allclose(np.asarray(ctx_probs), np.asarray(out_r), rtol=1e-4, atol=1e-6)
    np.testing.assert_allclose(np.asarray(ex), np.asarray(ex_r), rtol=1e-4, atol=1e-6)
    np.testing.assert_allclose(np.asarray(unc), np.asarray(unc_r), rtol=1e-3, atol=1e-5)

    print("KERNEL_OK")
</pallas_src>

<mosaic_0001>
module attributes {stable_mosaic.version = 11 : i64} {
  func.func @_belief_ppg_kernel(%arg0: memref<8x128xf32, #tpu.memory_space<vmem>>, %arg1: memref<128x128xf32, #tpu.memory_space<vmem>>, %arg2: memref<1x128xf32, #tpu.memory_space<vmem>>, %arg3: memref<1x128xf32, #tpu.memory_space<vmem>>, %arg4: memref<128x128xf32, #tpu.memory_space<vmem>>, %arg5: memref<8x128xf32, #tpu.memory_space<vmem>>, %arg6: memref<8x128xf32, #tpu.memory_space<vmem>>) attributes {dimension_semantics = [], scalar_prefetch = 0 : i64, scratch_operands = 0 : i64, tpu.core_type = #tpu.core_type<tc>} {
    %c0 = arith.constant 0 : index
    %c0_0 = arith.constant 0 : index
    %0 = vector.load %arg0[%c0, %c0_0] : memref<8x128xf32, #tpu.memory_space<vmem>>, vector<8x128xf32>
    %c0_1 = arith.constant 0 : index
    %c0_2 = arith.constant 0 : index
    %1 = vector.load %arg1[%c0_1, %c0_2] : memref<128x128xf32, #tpu.memory_space<vmem>>, vector<128x128xf32>
    %c0_3 = arith.constant 0 : index
    %c0_4 = arith.constant 0 : index
    %2 = vector.load %arg3[%c0_3, %c0_4] : memref<1x128xf32, #tpu.memory_space<vmem>>, vector<1x128xf32>
    %c0_5 = arith.constant 0 : index
    %c0_6 = arith.constant 0 : index
    %3 = vector.load %arg2[%c0_5, %c0_6] : memref<1x128xf32, #tpu.memory_space<vmem>>, vector<1x128xf32>
    %cst = arith.constant dense<0.000000e+00> : vector<1xf32>
    %4 = vector.multi_reduction <add>, %3, %cst [1] : vector<1x128xf32> to vector<1xf32>
    %5 = vector.shape_cast %4 : vector<1xf32> to vector<1x1xf32>
    %cst_7 = arith.constant dense<0.000000e+00> : vector<1x128xf32>
    %6 = tpu.matmul %3, %1, %cst_7 {dimension_numbers = #tpu.dot_dimension_numbers<[1], [0], [0], [1], [0, 0, 1, 1], [], []>} : vector<1x128xf32>, vector<128x128xf32>, vector<1x128xf32> -> vector<1x128xf32>
    %7 = vector.extract_strided_slice %0 {offsets = [0, 0], sizes = [1, 128], strides = [1, 1]} : vector<8x128xf32> to vector<1x128xf32>
    %8 = arith.mulf %6, %7 : vector<1x128xf32>
    %9 = vector.broadcast %5 : vector<1x1xf32> to vector<1x128xf32>
    %10 = arith.mulf %9, %2 : vector<1x128xf32>
    %11 = arith.addf %8, %10 : vector<1x128xf32>
    %cst_8 = arith.constant dense<0.000000e+00> : vector<1xf32>
    %12 = vector.multi_reduction <add>, %11, %cst_8 [1] : vector<1x128xf32> to vector<1xf32>
    %13 = vector.shape_cast %12 : vector<1xf32> to vector<1x1xf32>
    %14 = vector.broadcast %13 : vector<1x1xf32> to vector<1x128xf32>
    %15 = arith.divf %11, %14 : vector<1x128xf32>
    %cst_9 = arith.constant dense<0.000000e+00> : vector<1x128xf32>
    %16 = tpu.matmul %11, %1, %cst_9 {dimension_numbers = #tpu.dot_dimension_numbers<[1], [0], [0], [1], [0, 0, 1, 1], [], []>} : vector<1x128xf32>, vector<128x128xf32>, vector<1x128xf32> -> vector<1x128xf32>
    %17 = vector.extract_strided_slice %0 {offsets = [1, 0], sizes = [1, 128], strides = [1, 1]} : vector<8x128xf32> to vector<1x128xf32>
    %18 = arith.mulf %16, %17 : vector<1x128xf32>
    %19 = vector.broadcast %13 : vector<1x1xf32> to vector<1x128xf32>
    %20 = arith.mulf %19, %2 : vector<1x128xf32>
    %21 = arith.addf %18, %20 : vector<1x128xf32>
    %cst_10 = arith.constant dense<0.000000e+00> : vector<1xf32>
    %22 = vector.multi_reduction <add>, %21, %cst_10 [1] : vector<1x128xf32> to vector<1xf32>
    %23 = vector.shape_cast %22 : vector<1xf32> to vector<1x1xf32>
    %24 = vector.broadcast %23 : vector<1x1xf32> to vector<1x128xf32>
    %25 = arith.divf %21, %24 : vector<1x128xf32>
    %cst_11 = arith.constant dense<0.000000e+00> : vector<1x128xf32>
    %26 = tpu.matmul %21, %1, %cst_11 {dimension_numbers = #tpu.dot_dimension_numbers<[1], [0], [0], [1], [0, 0, 1, 1], [], []>} : vector<1x128xf32>, vector<128x128xf32>, vector<1x128xf32> -> vector<1x128xf32>
    %27 = vector.extract_strided_slice %0 {offsets = [2, 0], sizes = [1, 128], strides = [1, 1]} : vector<8x128xf32> to vector<1x128xf32>
    %28 = arith.mulf %26, %27 : vector<1x128xf32>
    %29 = vector.broadcast %23 : vector<1x1xf32> to vector<1x128xf32>
    %30 = arith.mulf %29, %2 : vector<1x128xf32>
    %31 = arith.addf %28, %30 : vector<1x128xf32>
    %cst_12 = arith.constant dense<0.000000e+00> : vector<1xf32>
    %32 = vector.multi_reduction <add>, %31, %cst_12 [1] : vector<1x128xf32> to vector<1xf32>
    %33 = vector.shape_cast %32 : vector<1xf32> to vector<1x1xf32>
    %34 = vector.broadcast %33 : vector<1x1xf32> to vector<1x128xf32>
    %35 = arith.divf %31, %34 : vector<1x128xf32>
    %cst_13 = arith.constant dense<0.000000e+00> : vector<1x128xf32>
    %36 = tpu.matmul %31, %1, %cst_13 {dimension_numbers = #tpu.dot_dimension_numbers<[1], [0], [0], [1], [0, 0, 1, 1], [], []>} : vector<1x128xf32>, vector<128x128xf32>, vector<1x128xf32> -> vector<1x128xf32>
    %37 = vector.extract_strided_slice %0 {offsets = [3, 0], sizes = [1, 128], strides = [1, 1]} : vector<8x128xf32> to vector<1x128xf32>
    %38 = arith.mulf %36, %37 : vector<1x128xf32>
    %39 = vector.broadcast %33 : vector<1x1xf32> to vector<1x128xf32>
    %40 = arith.mulf %39, %2 : vector<1x128xf32>
    %41 = arith.addf %38, %40 : vector<1x128xf32>
    %cst_14 = arith.constant dense<0.000000e+00> : vector<1xf32>
    %42 = vector.multi_reduction <add>, %41, %cst_14 [1] : vector<1x128xf32> to vector<1xf32>
    %43 = vector.shape_cast %42 : vector<1xf32> to vector<1x1xf32>
    %44 = vector.broadcast %43 : vector<1x1xf32> to vector<1x128xf32>
    %45 = arith.divf %41, %44 : vector<1x128xf32>
    %cst_15 = arith.constant dense<0.000000e+00> : vector<1x128xf32>
    %46 = tpu.matmul %41, %1, %cst_15 {dimension_numbers = #tpu.dot_dimension_numbers<[1], [0], [0], [1], [0, 0, 1, 1], [], []>} : vector<1x128xf32>, vector<128x128xf32>, vector<1x128xf32> -> vector<1x128xf32>
    %47 = vector.extract_strided_slice %0 {offsets = [4, 0], sizes = [1, 128], strides = [1, 1]} : vector<8x128xf32> to vector<1x128xf32>
    %48 = arith.mulf %46, %47 : vector<1x128xf32>
    %49 = vector.broadcast %43 : vector<1x1xf32> to vector<1x128xf32>
    %50 = arith.mulf %49, %2 : vector<1x128xf32>
    %51 = arith.addf %48, %50 : vector<1x128xf32>
    %cst_16 = arith.constant dense<0.000000e+00> : vector<1xf32>
    %52 = vector.multi_reduction <add>, %51, %cst_16 [1] : vector<1x128xf32> to vector<1xf32>
    %53 = vector.shape_cast %52 : vector<1xf32> to vector<1x1xf32>
    %54 = vector.broadcast %53 : vector<1x1xf32> to vector<1x128xf32>
    %55 = arith.divf %51, %54 : vector<1x128xf32>
    %cst_17 = arith.constant dense<0.000000e+00> : vector<1x128xf32>
    %56 = tpu.matmul %51, %1, %cst_17 {dimension_numbers = #tpu.dot_dimension_numbers<[1], [0], [0], [1], [0, 0, 1, 1], [], []>} : vector<1x128xf32>, vector<128x128xf32>, vector<1x128xf32> -> vector<1x128xf32>
    %57 = vector.extract_strided_slice %0 {offsets = [5, 0], sizes = [1, 128], strides = [1, 1]} : vector<8x128xf32> to vector<1x128xf32>
    %58 = arith.mulf %56, %57 : vector<1x128xf32>
    %59 = vector.broadcast %53 : vector<1x1xf32> to vector<1x128xf32>
    %60 = arith.mulf %59, %2 : vector<1x128xf32>
    %61 = arith.addf %58, %60 : vector<1x128xf32>
    %cst_18 = arith.constant dense<0.000000e+00> : vector<1xf32>
    %62 = vector.multi_reduction <add>, %61, %cst_18 [1] : vector<1x128xf32> to vector<1xf32>
    %63 = vector.shape_cast %62 : vector<1xf32> to vector<1x1xf32>
    %64 = vector.broadcast %63 : vector<1x1xf32> to vector<1x128xf32>
    %65 = arith.divf %61, %64 : vector<1x128xf32>
    %cst_19 = arith.constant dense<0.000000e+00> : vector<1x128xf32>
    %66 = tpu.matmul %61, %1, %cst_19 {dimension_numbers = #tpu.dot_dimension_numbers<[1], [0], [0], [1], [0, 0, 1, 1], [], []>} : vector<1x128xf32>, vector<128x128xf32>, vector<1x128xf32> -> vector<1x128xf32>
    %67 = vector.extract_strided_slice %0 {offsets = [6, 0], sizes = [1, 128], strides = [1, 1]} : vector<8x128xf32> to vector<1x128xf32>
    %68 = arith.mulf %66, %67 : vector<1x128xf32>
    %69 = vector.broadcast %63 : vector<1x1xf32> to vector<1x128xf32>
    %70 = arith.mulf %69, %2 : vector<1x128xf32>
    %71 = arith.addf %68, %70 : vector<1x128xf32>
    %cst_20 = arith.constant dense<0.000000e+00> : vector<1xf32>
    %72 = vector.multi_reduction <add>, %71, %cst_20 [1] : vector<1x128xf32> to vector<1xf32>
    %73 = vector.shape_cast %72 : vector<1xf32> to vector<1x1xf32>
    %74 = vector.broadcast %73 : vector<1x1xf32> to vector<1x128xf32>
    %75 = arith.divf %71, %74 : vector<1x128xf32>
    %cst_21 = arith.constant dense<0.000000e+00> : vector<1x128xf32>
    %76 = tpu.matmul %71, %1, %cst_21 {dimension_numbers = #tpu.dot_dimension_numbers<[1], [0], [0], [1], [0, 0, 1, 1], [], []>} : vector<1x128xf32>, vector<128x128xf32>, vector<1x128xf32> -> vector<1x128xf32>
    %77 = vector.extract_strided_slice %0 {offsets = [7, 0], sizes = [1, 128], strides = [1, 1]} : vector<8x128xf32> to vector<1x128xf32>
    %78 = arith.mulf %76, %77 : vector<1x128xf32>
    %79 = vector.broadcast %73 : vector<1x1xf32> to vector<1x128xf32>
    %80 = arith.mulf %79, %2 : vector<1x128xf32>
    %81 = arith.addf %78, %80 : vector<1x128xf32>
    %cst_22 = arith.constant dense<0.000000e+00> : vector<1xf32>
    %82 = vector.multi_reduction <add>, %81, %cst_22 [1] : vector<1x128xf32> to vector<1xf32>
    %83 = vector.shape_cast %82 : vector<1xf32> to vector<1x1xf32>
    %84 = vector.broadcast %83 : vector<1x1xf32> to vector<1x128xf32>
    %85 = arith.divf %81, %84 : vector<1x128xf32>
    %86 = tpu.concatenate %15, %25, %35, %45, %55, %65, %75, %85 in 0 : vector<1x128xf32>, vector<1x128xf32>, vector<1x128xf32>, vector<1x128xf32>, vector<1x128xf32>, vector<1x128xf32>, vector<1x128xf32>, vector<1x128xf32> -> vector<8x128xf32>
    %c0_23 = arith.constant 0 : index
    %c0_24 = arith.constant 0 : index
    %87 = vector.load %arg5[%c0_23, %c0_24] : memref<8x128xf32, #tpu.memory_space<vmem>>, vector<8x128xf32>
    tpu.vector_store %arg5[%c0_23, %c0_24], %86 {strides = array<i32>} : memref<8x128xf32, #tpu.memory_space<vmem>>, vector<8x128xf32>,
    %c0_25 = arith.constant 0 : index
    %c0_26 = arith.constant 0 : index
    %88 = vector.load %arg4[%c0_25, %c0_26] : memref<128x128xf32, #tpu.memory_space<vmem>>, vector<128x128xf32>
    %cst_27 = arith.constant dense<0.000000e+00> : vector<8x128xf32>
    %89 = tpu.matmul %86, %88, %cst_27 {dimension_numbers = #tpu.dot_dimension_numbers<[1], [0], [0], [1], [0, 0, 1, 1], [], []>} : vector<8x128xf32>, vector<128x128xf32>, vector<8x128xf32> -> vector<8x128xf32>
    %c0_28 = arith.constant 0 : index
    %c0_29 = arith.constant 0 : index
    %90 = vector.load %arg6[%c0_28, %c0_29] : memref<8x128xf32, #tpu.memory_space<vmem>>, vector<8x128xf32>
    tpu.vector_store %arg6[%c0_28, %c0_29], %89 {strides = array<i32>} : memref<8x128xf32, #tpu.memory_space<vmem>>, vector<8x128xf32>,
    return
  }
}

</mosaic_0001>

<bundles_post_ra>
// kernel: tpu_custom_call.1
= control target key start
LH: loop header
LB: loop body
LE: loop exit
PB: predicated region body
PF: predicated region fallthrough
CT: control target
= control target key end

     0   :  { %12 = vsyncpa [#allocation3], 0  ;;  %s2077_s0 = inlined_call_operand.hbm [shape: f32[8,128], index: 0, kind: input, shape index: {}]   ;;  %s2078_s1 = inlined_call_operand.hbm [shape: f32[128,128], index: 1, kind: input, shape index: {}]   ;;  %s2079_s2 = inlined_call_operand.vmem [shape: f32[1,128], index: 2, kind: input, shape index: {}]   ;;  %s2080_s3 = inlined_call_operand.vmem [shape: f32[1,128], index: 3, kind: input, shape index: {}]   ;;  %s2081_s4 = inlined_call_operand.hbm [shape: f32[128,128], index: 4, kind: input, shape index: {}]   ;;  %s2082_s5 = inlined_call_operand.hbm [shape: f32[8,128], index: 5, kind: output, shape index: {0}]   ;;  %s2083_s6 = inlined_call_operand.hbm [shape: f32[8,128], index: 6, kind: output, shape index: {1}]  }
   0x1   :  { %13 = vsyncpa [#allocation6], 0 }
   0x2   :  { %14 = vsyncpa [#allocation4], 0 }
   0x3   :  { %15 = vsyncpa [#allocation10], 0  ;;  %s1705_s21 = smov [#allocation5]   ;;  %s1587_s25 = scalar_lea.hbm %s2078_s1, 2048 }
   0x4   :  { %s31_s22 = sshll.u32 %s1705_s21, 4  ;;  %p1588_p0 = scmp.ne.s32.totalorder %s2078_s1, %s1587_s25  ;;  %s32_s22 = int_to_ptr.vmem [resolvable:$true] %s31_s22 }
   0x5   :  { %p1591_p1 = scmp.lt.u32.totalorder %s1587_s25, %s2078_s1 }
   0x7   :  { %p1593_p2 = pnand %p1591_p1, %p1588_p0 }
   0x9   :  { %1596 = shalt.err (!%p1593_p2)
}
   0xa   :  { %s1597_s30 = scalar_lea.vmem %s32_s22, 2048  ;;  %p1602_p4 = scmp.lt.s32.totalorder %s32_s22, %s32_s22 }
   0xb   :  { %p1598_p3 = scmp.ne.s32.totalorder %s32_s22, %s1597_s30  ;;  %p1603_p5 = scmp.lt.s32.totalorder %s1597_s30, %s1597_s30 }
   0xd   :  { %p1604_p6 = por %p1603_p5, %p1602_p4 }
   0xf   :  { %p1605_p7 = pnand %p1604_p6, %p1598_p3 }
  0x11   :  { %1608 = shalt.err (!%p1605_p7)
}
  0x12   :  { %s1706_s7 = smov 128   ;;  %s1707_s8 = smov 8  }
  0x13   :  { %37 = dma.hbm_to_vmem [thread:$0]  %s2078_s1, 2048, %s32_s22, [#allocation6], %s1706_s7, %s1706_s7, %s1707_s8  }
  0x14   :  { %s1708_s11 = smov [#allocation2]   ;;  %s1709_s13 = smov [#allocation7]  }
  0x15   :  { %s22_s12 = sshll.u32 %s1708_s11, 4  ;;  %s47_s14 = sshll.u32 %s1709_s13, 4  ;;  %s23_s12 = int_to_ptr.vmem [resolvable:$true] %s22_s12  ;;  %s48_s14 = int_to_ptr.vmem [resolvable:$true] %s47_s14 }
  0x16   :  { %s1609_s17 = scalar_lea.hbm %s2077_s0, 128 }
  0x17   :  { %p1610_p8 = scmp.ne.s32.totalorder %s2077_s0, %s1609_s17  ;;  %p1613_p9 = scmp.lt.u32.totalorder %s1609_s17, %s2077_s0 }
  0x19   :  { %p1615_p10 = pnand %p1613_p9, %p1610_p8 }
  0x1b   :  { %1618 = shalt.err (!%p1615_p10)
}
  0x1c   :  { %s1619_s1 = scalar_lea.vmem %s23_s12, 128  ;;  %p1624_p12 = scmp.lt.s32.totalorder %s23_s12, %s23_s12 }
  0x1d   :  { %p1620_p11 = scmp.ne.s32.totalorder %s23_s12, %s1619_s1  ;;  %p1625_p13 = scmp.lt.s32.totalorder %s1619_s1, %s1619_s1 }
  0x1f   :  { %p1626_p0 = por %p1625_p13, %p1624_p12 }
  0x21   :  { %p1627_p1 = pnand %p1626_p0, %p1620_p11 }
  0x23   :  { %1630 = shalt.err (!%p1627_p1)
}
  0x24   :  { %25 = dma.hbm_to_vmem [thread:$0]  %s2077_s0, 128, %s23_s12, [#allocation3]  }
  0x25   :  { %s1631_s26 = scalar_lea.hbm %s2081_s4, 2048 }
  0x26   :  { %p1632_p2 = scmp.ne.s32.totalorder %s2081_s4, %s1631_s26  ;;  %p1635_p3 = scmp.lt.u32.totalorder %s1631_s26, %s2081_s4 }
  0x28   :  { %p1637_p4 = pnand %p1635_p3, %p1632_p2 }
  0x2a   :  { %1640 = shalt.err (!%p1637_p4)
}
  0x2b   :  { %s1641_s9 = scalar_lea.vmem %s48_s14, 2048  ;;  %p1646_p6 = scmp.lt.s32.totalorder %s48_s14, %s48_s14 }
  0x2c   :  { %p1642_p5 = scmp.ne.s32.totalorder %s48_s14, %s1641_s9  ;;  %p1647_p7 = scmp.lt.s32.totalorder %s1641_s9, %s1641_s9 }
  0x2e   :  { %p1648_p8 = por %p1647_p7, %p1646_p6 }
  0x30   :  { %p1649_p9 = pnand %p1648_p8, %p1642_p5 }
  0x32   :  { %1652 = shalt.err (!%p1649_p9)
}
  0x33   :  { %53 = dma.hbm_to_vmem [thread:$0]  %s2081_s4, 2048, %s48_s14, [#allocation6], %s1706_s7, %s1706_s7, %s1707_s8  }
  0x34   :  { %1697 = dma.done.wait [#allocation3], 128  }
  0x35   :  { %1698 = vsyncadd [#allocation3], 4294967168 }
  0x36   :  { %1699 = dma.done.wait [#allocation6], 4096  }
  0x37   :  { %1700 = vsyncadd [#allocation6], 4294963200  ;;  %v1710_v0 = vmov 0.0|0.0   ;;  %vm1711_vm0 = vmmov 0   ;;  %v1712_v1 = vmov 0.0   ;;  %v64_v2 = vld [vmem:[#allocation5] sm:$0xff] }
  0x38   :  { %1345 = vmatprep.subr.bf16.mxu0 %v1710_v0  ;;  %1062 = vmatprep.mubr.msk.f32.mxu0 %vm1711_vm0, %v1712_v1  ;;  %v65_v3 = vld [vmem:[#allocation5 + $0x8] sm:$0xff]  ;;  %v66_v4 = vld [vmem:[#allocation5 + $0x10] sm:$0xff]  ;;  %v67_v6 = vld [vmem:[#allocation5 + $0x18] sm:$0xff]  ;;  %vm82_vm1 = vcmask 1040384   ;;  %vm747_vm2 = vcmask 1041408   ;;  %vm749_vm3 = vcmask 1042432  }
  0x39   :  { %1369 = vmatprep.subr.bf16.mxu1 %v1710_v0  ;;  %1097 = vmatprep.mubr.msk.f32.mxu1 %vm1711_vm0, %v1712_v1  ;;  %v1798_v5 = vpack.c.bf16 %v65_v3, %v64_v2  ;;  %v1801_v7 = vpack.c.bf16 %v67_v6, %v66_v4  ;;  %v68_v8 = vld [vmem:[#allocation5 + $0x20] sm:$0xff]  ;;  %v69_v9 = vld [vmem:[#allocation5 + $0x28] sm:$0xff]  ;;  %v81_v10 = vld [vmem:[%s2079_s2] sm:$0x1]  ;;  %vm751_vm4 = vcmask 1043456   ;;  %vm753_vm5 = vcmask 1044480  }
  0x3a   :  { %v83_v11 = vsel %vm82_vm1, %v81_v10, 0.0  ;;  %v1811_v12 = vpack.c.bf16 %v69_v9, %v68_v8  ;;  %v70_v13 = vld [vmem:[#allocation5 + $0x30] sm:$0xff]  ;;  %v71_v14 = vld [vmem:[#allocation5 + $0x38] sm:$0xff]  ;;  %v72_v16 = vld [vmem:[#allocation5 + $0x40] sm:$0xff]  ;;  %vm755_vm6 = vcmask 1045504   ;;  %vm757_vm7 = vcmask 1046528  }
  0x3b   :  { %1347 = vmatpush3.bf16.msra.mxu0 %v1798_v5  ;;  %1371 = vmatpush3.bf16.msra.mxu1 %v1798_v5  ;;  %v1817_v15 = vpack.c.bf16 %v71_v14, %v70_v13  ;;  %v73_v17 = vld [vmem:[#allocation5 + $0x48] sm:$0xff]  ;;  %v74_v19 = vld [vmem:[#allocation5 + $0x50] sm:$0xff]  ;;  %v75_v20 = vld [vmem:[#allocation5 + $0x58] sm:$0xff] }
  0x3c   :  { %1348 = vmatprep.subr.bf16.mxu0 %v1710_v0  ;;  %1372 = vmatprep.subr.bf16.mxu1 %v1710_v0  ;;  %v1823_v18 = vpack.c.bf16 %v73_v17, %v72_v16  ;;  %v1829_v21 = vpack.c.bf16 %v75_v20, %v74_v19  ;;  %v76_v22 = vld [vmem:[#allocation5 + $0x60] sm:$0xff]  ;;  %v77_v23 = vld [vmem:[#allocation5 + $0x68] sm:$0xff]  ;;  %v78_v25 = vld [vmem:[#allocation5 + $0x70] sm:$0xff] }
  0x3d   :  { %84 = vadd.xlane.f32.xlu0 %v83_v11  ;;  %v1835_v24 = vpack.c.bf16 %v77_v23, %v76_v22  ;;  %v79_v26 = vld [vmem:[#allocation5 + $0x78] sm:$0xff]  ;;  %v760_v23 = vld [vmem:[#allocation7] sm:$0xff] }
  0x3e   :  { %v1841_v27 = vpack.c.bf16 %v79_v26, %v78_v25  ;;  %v1871_v29 = vld [vmem:[%s2080_s3] sm:$0x1]  ;;  %v762_v25 = vld [vmem:[#allocation7 + $0x10] sm:$0xff]  ;;  %s1713_s3 = smov [#allocation8]  }
  0x3f   :  { %1350 = vmatpush3.bf16.msra.mxu0 %v1801_v7  ;;  %1374 = vmatpush3.bf16.msra.mxu1 %v1801_v7  ;;  %v1873_v30 = vld [vmem:[#allocation2] sm:$0xff]  ;;  %s853_s11 = sshll.u32 %s1713_s3, 4  ;;  %s854_s11 = int_to_ptr.vmem [resolvable:$true] %s853_s11 }
  0x40   :  { %1351 = vmatprep.subr.bf16.mxu0 %v1710_v0  ;;  %1375 = vmatprep.subr.bf16.mxu1 %v1710_v0  ;;  %v235_v37 = vrot.slane %v1873_v30, 1  ;;  %v315_v45 = vrot.slane %v1873_v30, 2  ;;  %v395_v53 = vrot.slane %v1873_v30, 3  ;;  %v475_v61 = vrot.slane %v1873_v30, 4  ;;  %v763_v26 = vld [vmem:[#allocation7 + $0x18] sm:$0xff]  ;;  %s1653_s12 = scalar_lea.vmem %s854_s11, 128  ;;  %p1658_p11 = scmp.lt.s32.totalorder %s854_s11, %s854_s11 }
  0x41   :  { %p1654_p10 = scmp.ne.s32.totalorder %s854_s11, %s1653_s12  ;;  %p1659_p12 = scmp.lt.s32.totalorder %s1653_s12, %s1653_s12 }
  0x43   :  { %1353 = vmatpush3.bf16.msra.mxu0 %v1811_v12  ;;  %1377 = vmatpush3.bf16.msra.mxu1 %v1811_v12  ;;  %p1660_p13 = por %p1659_p12, %p1658_p11 }
  0x44   :  { %1354 = vmatprep.subr.bf16.mxu0 %v1710_v0  ;;  %1378 = vmatprep.subr.bf16.mxu1 %v1710_v0 }
  0x45   :  { %p1661_p0 = pnand %p1660_p13, %p1654_p10 }
  0x47   :  { %1356 = vmatpush3.bf16.msra.mxu0 %v1817_v15  ;;  %1380 = vmatpush3.bf16.msra.mxu1 %v1817_v15 }
  0x48   :  { %1357 = vmatprep.subr.bf16.mxu0 %v1710_v0  ;;  %1381 = vmatprep.subr.bf16.mxu1 %v1710_v0 }
  0x4b   :  { %1359 = vmatpush3.bf16.msra.mxu0 %v1823_v18  ;;  %1383 = vmatpush3.bf16.msra.mxu1 %v1823_v18 }
  0x4c   :  { %1360 = vmatprep.subr.bf16.mxu0 %v1710_v0  ;;  %1384 = vmatprep.subr.bf16.mxu1 %v1710_v0 }
  0x4f   :  { %1362 = vmatpush3.bf16.msra.mxu0 %v1829_v21  ;;  %1386 = vmatpush3.bf16.msra.mxu1 %v1829_v21 }
  0x50   :  { %1363 = vmatprep.subr.bf16.mxu0 %v1710_v0  ;;  %1387 = vmatprep.subr.bf16.mxu1 %v1710_v0 }
  0x53   :  { %1365 = vmatpush3.bf16.msra.mxu0 %v1835_v24  ;;  %1389 = vmatpush3.bf16.msra.mxu1 %v1835_v24 }
  0x54   :  { %1366 = vmatprep.subr.bf16.mxu0 %v1710_v0  ;;  %1390 = vmatprep.subr.bf16.mxu1 %v1710_v0 }
  0x57   :  { %1368 = vmatpush3.bf16.msra.mxu0 %v1841_v27  ;;  %1392 = vmatpush3.bf16.msra.mxu1 %v1841_v27 }
  0x58   :  { %1393 = vmatprep.subr.bf16.mxu0 %v1710_v0  ;;  %1417 = vmatprep.subr.bf16.mxu1 %v1710_v0 }
  0x5a   :  { %1063 = vmatmul.mubr.f32.vlgmr.msra.gmra.mrb[0].mxu0 %v81_v10 }
  0x5b   :  { %1395 = vmatpush3.bf16.msra.mxu0 %v1798_v5  ;;  %1132 = vmatprep.mubr.msk.f32.mxu0 %vm1711_vm0, %v1712_v1 }
  0x5c   :  { %1396 = vmatprep.subr.bf16.mxu0 %v1710_v0 }
  0x5f   :  { %1398 = vmatpush3.bf16.msra.mxu0 %v1801_v7 }
  0x60   :  { %1399 = vmatprep.subr.bf16.mxu0 %v1710_v0 }
  0x63   :  { %1401 = vmatpush3.bf16.msra.mxu0 %v1811_v12 }
  0x64   :  { %1402 = vmatprep.subr.bf16.mxu0 %v1710_v0 }
  0x67   :  { %1404 = vmatpush3.bf16.msra.mxu0 %v1817_v15 }
  0x68   :  { %1405 = vmatprep.subr.bf16.mxu0 %v1710_v0 }
  0x6b   :  { %1407 = vmatpush3.bf16.msra.mxu0 %v1823_v18 }
  0x6c   :  { %1408 = vmatprep.subr.bf16.mxu0 %v1710_v0 }
  0x6f   :  { %1410 = vmatpush3.bf16.msra.mxu0 %v1829_v21 }
  0x70   :  { %1411 = vmatprep.subr.bf16.mxu0 %v1710_v0 }
  0x73   :  { %1413 = vmatpush3.bf16.msra.mxu0 %v1835_v24 }
  0x74   :  { %1414 = vmatprep.subr.bf16.mxu0 %v1710_v0 }
  0x77   :  { %1416 = vmatpush3.bf16.msra.mxu0 %v1841_v27 }
  0x78   :  { %1441 = vmatprep.subr.bf16.mxu0 %v1710_v0 }
  0xca   :  { %v85_v28 = vpop.xlane.xlu0 %84 }
  0xcb   :  { %v157_v31 = vmul.f32 %v85_v28, %v1871_v29  ;;  %v764_v28 = vld [vmem:[#allocation7 + $0x20] sm:$0xff] }
 0x12d   :  { %v152_v32 = vpop.f32.mrb[0].mxu0 }
 0x12e   :  { %v156_v33 = vmul.f32 %v152_v32, %v1873_v30  ;;  %v1064_v34 = vpop.f32.mrb[1].mxu0 }
 0x12f   :  { %v767_v34 = vld [vmem:[#allocation7 + $0x38] sm:$0xff] }
 0x130   :  { %v1877_v35 = vadd.f32 %v157_v31, %v156_v33  ;;  %v765_v31 = vld [vmem:[#allocation7 + $0x28] sm:$0xff]  ;;  %v766_v33 = vld [vmem:[#allocation7 + $0x30] sm:$0xff] }
 0x131   :  { %v1544_v32 = vpack.c.bf16 %v765_v31, %v764_v28 }
 0x132   :  { %1098 = vmatmul.mubr.f32.vlgmr.msra.gmra.mrb[0].mxu1 %v1877_v35  ;;  %v159_v36 = vsel %vm82_vm1, %v1877_v35, 0.0 }
 0x133   :  { %160 = vadd.xlane.f32.xlu0 %v159_v36  ;;  %1419 = vmatpush3.bf16.msra.mxu1 %v1798_v5  ;;  %v1547_v36 = vpack.c.bf16 %v767_v34, %v766_v33 }
 0x134   :  { %1420 = vmatprep.subr.bf16.mxu1 %v1710_v0  ;;  %1167 = vmatprep.mubr.msk.f32.mxu1 %vm1711_vm0, %v1712_v1 }
 0x137   :  { %1422 = vmatpush3.bf16.msra.mxu1 %v1801_v7 }
 0x138   :  { %1423 = vmatprep.subr.bf16.mxu1 %v1710_v0 }
 0x13b   :  { %1425 = vmatpush3.bf16.msra.mxu1 %v1811_v12 }
 0x13c   :  { %1426 = vmatprep.subr.bf16.mxu1 %v1710_v0 }
 0x13f   :  { %1428 = vmatpush3.bf16.msra.mxu1 %v1817_v15 }
 0x140   :  { %1429 = vmatprep.subr.bf16.mxu1 %v1710_v0 }
 0x143   :  { %1431 = vmatpush3.bf16.msra.mxu1 %v1823_v18 }
 0x144   :  { %1432 = vmatprep.subr.bf16.mxu1 %v1710_v0 }
 0x147   :  { %1434 = vmatpush3.bf16.msra.mxu1 %v1829_v21 }
 0x148   :  { %1435 = vmatprep.subr.bf16.mxu1 %v1710_v0 }
 0x14b   :  { %1437 = vmatpush3.bf16.msra.mxu1 %v1835_v24 }
 0x14c   :  { %1438 = vmatprep.subr.bf16.mxu1 %v1710_v0 }
 0x14f   :  { %1440 = vmatpush3.bf16.msra.mxu1 %v1841_v27 }
 0x150   :  { %1465 = vmatprep.subr.bf16.mxu1 %v1710_v0 }
 0x1c0   :  { %v1901_v38 = vpop.xlane.xlu0 %160 }
 0x1c1   :  { %v238_v40 = vmul.f32 %v1901_v38, %v1871_v29 }
 0x205   :  { %v230_v39 = vpop.f32.mrb[0].mxu1 }
 0x206   :  { %v237_v41 = vmul.f32 %v235_v37, %v230_v39  ;;  %v1099_v42 = vpop.f32.mrb[1].mxu1  ;;  %v715_v37 = vrot.slane %v1873_v30, 7 }
 0x208   :  { %v1905_v43 = vadd.f32 %v238_v40, %v237_v41 }
 0x20a   :  { %1133 = vmatmul.mubr.f32.vlgmr.msra.gmra.mrb[2].mxu0 %v1905_v43  ;;  %v240_v44 = vsel %vm82_vm1, %v1905_v43, 0.0 }
 0x20b   :  { %241 = vadd.xlane.f32.xlu1 %v240_v44  ;;  %1443 = vmatpush3.bf16.msra.mxu0 %v1798_v5 }
 0x20c   :  { %1444 = vmatprep.subr.bf16.mxu0 %v1710_v0  ;;  %1202 = vmatprep.mubr.msk.f32.mxu0 %vm1711_vm0, %v1712_v1 }
 0x20f   :  { %1446 = vmatpush3.bf16.msra.mxu0 %v1801_v7 }
 0x210   :  { %1447 = vmatprep.subr.bf16.mxu0 %v1710_v0 }
 0x213   :  { %1449 = vmatpush3.bf16.msra.mxu0 %v1811_v12 }
 0x214   :  { %1450 = vmatprep.subr.bf16.mxu0 %v1710_v0 }
 0x217   :  { %1452 = vmatpush3.bf16.msra.mxu0 %v1817_v15 }
 0x218   :  { %1453 = vmatprep.subr.bf16.mxu0 %v1710_v0 }
 0x21b   :  { %1455 = vmatpush3.bf16.msra.mxu0 %v1823_v18 }
 0x21c   :  { %1456 = vmatprep.subr.bf16.mxu0 %v1710_v0 }
 0x21f   :  { %1458 = vmatpush3.bf16.msra.mxu0 %v1829_v21 }
 0x220   :  { %1459 = vmatprep.subr.bf16.mxu0 %v1710_v0 }
 0x223   :  { %1461 = vmatpush3.bf16.msra.mxu0 %v1835_v24 }
 0x224   :  { %1462 = vmatprep.subr.bf16.mxu0 %v1710_v0 }
 0x227   :  { %1464 = vmatpush3.bf16.msra.mxu0 %v1841_v27 }
 0x228   :  { %1489 = vmatprep.subr.bf16.mxu0 %v1710_v0 }
 0x298   :  { %v1929_v46 = vpop.xlane.xlu1 %241 }
 0x299   :  { %v318_v48 = vmul.f32 %v1929_v46, %v1871_v29  ;;  %1571 = vrcp.f32 %v1929_v46 }
 0x2dd   :  { %v311_v47 = vpop.f32.mrb[2].mxu0 }
 0x2de   :  { %v317_v49 = vmul.f32 %v315_v45, %v311_v47  ;;  %v1134_v50 = vpop.f32.mrb[3].mxu0 }
 0x2e0   :  { %v1933_v51 = vadd.f32 %v318_v48, %v317_v49  ;;  %v768_v48 = vld [vmem:[#allocation7 + $0x40] sm:$0xff]  ;;  %v769_v49 = vld [vmem:[#allocation7 + $0x48] sm:$0xff] }
 0x2e1   :  { %v1550_v50 = vpack.c.bf16 %v769_v49, %v768_v48 }
 0x2e2   :  { %1168 = vmatmul.mubr.f32.vlgmr.msra.gmra.mrb[2].mxu1 %v1933_v51  ;;  %v320_v52 = vsel %vm82_vm1, %v1933_v51, 0.0 }
 0x2e3   :  { %321 = vadd.xlane.f32.xlu1 %v320_v52  ;;  %1467 = vmatpush3.bf16.msra.mxu1 %v1798_v5  ;;  %v770_v52 = vld [vmem:[#allocation7 + $0x50] sm:$0xff] }
 0x2e4   :  { %1468 = vmatprep.subr.bf16.mxu1 %v1710_v0  ;;  %1237 = vmatprep.mubr.msk.f32.mxu1 %vm1711_vm0, %v1712_v1 }
 0x2e7   :  { %1470 = vmatpush3.bf16.msra.mxu1 %v1801_v7 }
 0x2e8   :  { %1471 = vmatprep.subr.bf16.mxu1 %v1710_v0 }
 0x2eb   :  { %1473 = vmatpush3.bf16.msra.mxu1 %v1811_v12 }
 0x2ec   :  { %1474 = vmatprep.subr.bf16.mxu1 %v1710_v0 }
 0x2ef   :  { %1476 = vmatpush3.bf16.msra.mxu1 %v1817_v15 }
 0x2f0   :  { %1477 = vmatprep.subr.bf16.mxu1 %v1710_v0 }
 0x2f3   :  { %1479 = vmatpush3.bf16.msra.mxu1 %v1823_v18 }
 0x2f4   :  { %1480 = vmatprep.subr.bf16.mxu1 %v1710_v0 }
 0x2f7   :  { %1482 = vmatpush3.bf16.msra.mxu1 %v1829_v21 }
 0x2f8   :  { %1483 = vmatprep.subr.bf16.mxu1 %v1710_v0 }
 0x2fb   :  { %1485 = vmatpush3.bf16.msra.mxu1 %v1835_v24 }
 0x2fc   :  { %1486 = vmatprep.subr.bf16.mxu1 %v1710_v0 }
 0x2ff   :  { %1488 = vmatpush3.bf16.msra.mxu1 %v1841_v27 }
 0x300   :  { %1513 = vmatprep.subr.bf16.mxu1 %v1710_v0 }
 0x370   :  { %v1957_v54 = vpop.xlane.xlu1 %321 }
 0x371   :  { %v398_v56 = vmul.f32 %v1957_v54, %v1871_v29  ;;  %1573 = vrcp.f32 %v1957_v54 }
 0x3b5   :  { %v391_v55 = vpop.f32.mrb[2].mxu1 }
 0x3b6   :  { %v397_v57 = vmul.f32 %v395_v53, %v391_v55  ;;  %v1169_v58 = vpop.f32.mrb[3].mxu1  ;;  %v771_v53 = vld [vmem:[#allocation7 + $0x58] sm:$0xff] }
 0x3b7   :  { %v1553_v55 = vpack.c.bf16 %v771_v53, %v770_v52  ;;  %v775_v58 = vld [vmem:[#allocation7 + $0x78] sm:$0xff] }
 0x3b8   :  { %v1961_v59 = vadd.f32 %v398_v56, %v397_v57  ;;  %v773_v56 = vld [vmem:[#allocation7 + $0x68] sm:$0xff] }
 0x3ba   :  { %1203 = vmatmul.mubr.f32.vlgmr.msra.gmra.mrb[4].mxu0 %v1961_v59  ;;  %v400_v60 = vsel %vm82_vm1, %v1961_v59, 0.0 }
 0x3bb   :  { %401 = vadd.xlane.f32.xlu0 %v400_v60  ;;  %1491 = vmatpush3.bf16.msra.mxu0 %v1798_v5 }
 0x3bc   :  { %1492 = vmatprep.subr.bf16.mxu0 %v1710_v0  ;;  %1272 = vmatprep.mubr.msk.f32.mxu0 %vm1711_vm0, %v1712_v1 }
 0x3bf   :  { %1494 = vmatpush3.bf16.msra.mxu0 %v1801_v7 }
 0x3c0   :  { %1495 = vmatprep.subr.bf16.mxu0 %v1710_v0 }
 0x3c3   :  { %1497 = vmatpush3.bf16.msra.mxu0 %v1811_v12 }
 0x3c4   :  { %1498 = vmatprep.subr.bf16.mxu0 %v1710_v0 }
 0x3c7   :  { %1500 = vmatpush3.bf16.msra.mxu0 %v1817_v15 }
 0x3c8   :  { %1501 = vmatprep.subr.bf16.mxu0 %v1710_v0 }
 0x3cb   :  { %1503 = vmatpush3.bf16.msra.mxu0 %v1823_v18 }
 0x3cc   :  { %1504 = vmatprep.subr.bf16.mxu0 %v1710_v0 }
 0x3cf   :  { %1506 = vmatpush3.bf16.msra.mxu0 %v1829_v21 }
 0x3d0   :  { %1507 = vmatprep.subr.bf16.mxu0 %v1710_v0 }
 0x3d3   :  { %1509 = vmatpush3.bf16.msra.mxu0 %v1835_v24 }
 0x3d4   :  { %1510 = vmatprep.subr.bf16.mxu0 %v1710_v0 }
 0x3d7   :  { %1512 = vmatpush3.bf16.msra.mxu0 %v1841_v27 }
 0x3d8   :  { %1537 = vmatprep.subr.bf16.mxu0 %v1710_v0 }
 0x448   :  { %v1985_v62 = vpop.xlane.xlu0 %401 }
 0x449   :  { %v478_v2 = vmul.f32 %v1985_v62, %v1871_v29  ;;  %1575 = vrcp.f32 %v1985_v62 }
 0x48d   :  { %v471_v63 = vpop.f32.mrb[4].mxu0 }
 0x48e   :  { %v477_v3 = vmul.f32 %v475_v61, %v471_v63  ;;  %v1204_v4 = vpop.f32.mrb[5].mxu0  ;;  %v1572_v61 = vpop.eup %1571 }
 0x48f   :  { %v1574_v63 = vpop.eup %1573 }
 0x490   :  { %v1989_v6 = vadd.f32 %v478_v2, %v477_v3  ;;  %v1576_v3 = vpop.eup %1575  ;;  %v324_v46 = vmul.f32 %v1574_v63, %v1933_v51 }
 0x491   :  { %v404_v62 = vmul.f32 %v1576_v3, %v1961_v59 }
 0x492   :  { %1238 = vmatmul.mubr.f32.vlgmr.msra.gmra.mrb[4].mxu1 %v1989_v6  ;;  %v480_v8 = vsel %vm82_vm1, %v1989_v6, 0.0 }
 0x493   :  { %481 = vadd.xlane.f32.xlu1 %v480_v8  ;;  %1515 = vmatpush3.bf16.msra.mxu1 %v1798_v5  ;;  %v555_v5 = vrot.slane %v1873_v30, 5 }
 0x494   :  { %1516 = vmatprep.subr.bf16.mxu1 %v1710_v0  ;;  %1307 = vmatprep.mubr.msk.f32.mxu1 %vm1711_vm0, %v1712_v1 }
 0x497   :  { %1518 = vmatpush3.bf16.msra.mxu1 %v1801_v7 }
 0x498   :  { %1519 = vmatprep.subr.bf16.mxu1 %v1710_v0 }
 0x49b   :  { %1521 = vmatpush3.bf16.msra.mxu1 %v1811_v12 }
 0x49c   :  { %1522 = vmatprep.subr.bf16.mxu1 %v1710_v0 }
 0x49f   :  { %1524 = vmatpush3.bf16.msra.mxu1 %v1817_v15  ;;  %v635_v15 = vrot.slane %v1873_v30, 6  ;;  %v772_v30 = vld [vmem:[#allocation7 + $0x60] sm:$0xff] }
 0x4a0   :  { %1525 = vmatprep.subr.bf16.mxu1 %v1710_v0  ;;  %v1556_v57 = vpack.c.bf16 %v773_v56, %v772_v30 }
 0x4a3   :  { %1527 = vmatpush3.bf16.msra.mxu1 %v1823_v18 }
 0x4a4   :  { %1528 = vmatprep.subr.bf16.mxu1 %v1710_v0 }
 0x4a7   :  { %1530 = vmatpush3.bf16.msra.mxu1 %v1829_v21 }
 0x4a8   :  { %1531 = vmatprep.subr.bf16.mxu1 %v1710_v0 }
 0x4ab   :  { %1533 = vmatpush3.bf16.msra.mxu1 %v1835_v24  ;;  %v761_v24 = vld [vmem:[#allocation7 + $0x8] sm:$0xff] }
 0x4ac   :  { %1534 = vmatprep.subr.bf16.mxu1 %v1710_v0 }
 0x4af   :  { %1536 = vmatpush3.bf16.msra.mxu1 %v1841_v27  ;;  %v1541_v27 = vpack.c.bf16 %v763_v26, %v762_v25 }
 0x520   :  { %v2012_v7 = vpop.xlane.xlu1 %481 }
 0x521   :  { %v558_v10 = vmul.f32 %v2012_v7, %v1871_v29  ;;  %1577 = vrcp.f32 %v2012_v7 }
 0x52b   :  { %v1578_v4 = vpop.eup %1577 }
 0x52c   :  { %v484_v7 = vmul.f32 %v1578_v4, %v1989_v6 }
 0x565   :  { %v551_v9 = vpop.f32.mrb[4].mxu1 }
 0x566   :  { %v557_v11 = vmul.f32 %v555_v5, %v551_v9  ;;  %v1239_v12 = vpop.f32.mrb[5].mxu1 }
 0x568   :  { %v2016_v13 = vadd.f32 %v558_v10, %v557_v11  ;;  %v729_v10 = vrot.slane %v324_v46, 6 }
 0x56a   :  { %1273 = vmatmul.mubr.f32.vlgmr.msra.gmra.mrb[6].mxu0 %v2016_v13  ;;  %v560_v14 = vsel %vm82_vm1, %v2016_v13, 0.0 }
 0x56b   :  { %561 = vadd.xlane.f32.xlu0 %v560_v14  ;;  %1342 = vmatprep.mubr.msk.f32.mxu0 %vm1711_vm0, %v1712_v1  ;;  %v1538_v1 = vpack.c.bf16 %v761_v24, %v760_v23  ;;  %v732_v14 = vrot.slane %v404_v62, 5 }
 0x56d   :  { %1539 = vmatpush3.bf16.msra.mxu0 %v1538_v1 }
 0x56e   :  { %1540 = vmatprep.subr.bf16.mxu0 %v1710_v0 }
 0x571   :  { %1542 = vmatpush3.bf16.msra.mxu0 %v1541_v27 }
 0x572   :  { %1543 = vmatprep.subr.bf16.mxu0 %v1710_v0 }
 0x575   :  { %1545 = vmatpush3.bf16.msra.mxu0 %v1544_v32 }
 0x576   :  { %1546 = vmatprep.subr.bf16.mxu0 %v1710_v0 }
 0x579   :  { %1548 = vmatpush3.bf16.msra.mxu0 %v1547_v36 }
 0x57a   :  { %1549 = vmatprep.subr.bf16.mxu0 %v1710_v0 }
 0x57d   :  { %1551 = vmatpush3.bf16.msra.mxu0 %v1550_v50 }
 0x57e   :  { %1552 = vmatprep.subr.bf16.mxu0 %v1710_v0 }
 0x581   :  { %1554 = vmatpush3.bf16.msra.mxu0 %v1553_v55 }
 0x582   :  { %1555 = vmatprep.subr.bf16.mxu0 %v1710_v0 }
 0x585   :  { %1557 = vmatpush3.bf16.msra.mxu0 %v1556_v57 }
 0x586   :  { %1558 = vmatprep.subr.bf16.mxu0 %v1710_v0  ;;  %v244_v0 = vmul.f32 %v1572_v61, %v1905_v43  ;;  %v735_v43 = vrot.slane %v484_v7, 4 }
 0x588   :  { %v726_v9 = vrot.slane %v244_v0, 7 }
 0x5f8   :  { %v562_v16 = vpop.xlane.xlu0 %561 }
 0x5f9   :  { %v638_v18 = vmul.f32 %v562_v16, %v1871_v29  ;;  %1579 = vrcp.f32 %v562_v16 }
 0x603   :  { %v1580_v8 = vpop.eup %1579 }
 0x63d   :  { %v631_v17 = vpop.f32.mrb[6].mxu0 }
 0x63e   :  { %v637_v19 = vmul.f32 %v635_v15, %v631_v17  ;;  %v1274_v20 = vpop.f32.mrb[7].mxu0 }
 0x640   :  { %v2025_v21 = vadd.f32 %v638_v18, %v637_v19 }
 0x642   :  { %1308 = vmatmul.mubr.f32.vlgmr.msra.gmra.mrb[6].mxu1 %v2025_v21  ;;  %v640_v22 = vsel %vm82_vm1, %v2025_v21, 0.0 }
 0x643   :  { %641 = vadd.xlane.f32.xlu1 %v640_v22 }
 0x6d0   :  { %v642_v39 = vpop.xlane.xlu1 %641 }
 0x6d1   :  { %v718_v41 = vmul.f32 %v642_v39, %v1871_v29  ;;  %v774_v29 = vld [vmem:[#allocation7 + $0x70] sm:$0xff]  ;;  %1581 = vrcp.f32 %v642_v39 }
 0x6d2   :  { %v1559_v60 = vpack.c.bf16 %v775_v58, %v774_v29  ;;  %1583 = vrcp.f32 %v1901_v38  ;;  %v564_v38 = vmul.f32 %v1580_v8, %v2016_v13 }
 0x6d4   :  { %1560 = vmatpush3.bf16.msra.mxu0 %v1559_v60  ;;  %v738_v15 = vrot.slane %v564_v38, 3 }
 0x6db   :  { %v1582_v54 = vpop.eup %1581 }
 0x6dc   :  { %v1584_v5 = vpop.eup %1583  ;;  %v644_v11 = vmul.f32 %v1582_v54, %v2025_v21 }
 0x6dd   :  { %v163_v12 = vmul.f32 %v1584_v5, %v1877_v35 }
 0x6de   :  { %v741_v16 = vrot.slane %v644_v11, 2 }
 0x6df   :  { %v746_v51 = vsel %vm82_vm1, %v163_v12, %v726_v9 }
 0x6e0   :  { %v748_v17 = vsel %vm747_vm2, %v746_v51, %v729_v10 }
 0x6e1   :  { %v750_v18 = vsel %vm749_vm3, %v748_v17, %v732_v14 }
 0x6e2   :  { %v752_v13 = vsel %vm751_vm4, %v750_v18, %v735_v43 }
 0x6e3   :  { %v754_v20 = vsel %vm753_vm5, %v752_v13, %v738_v15 }
 0x6e4   :  { %v756_v35 = vsel %vm755_vm6, %v754_v20, %v741_v16 }
 0x715   :  { %v711_v40 = vpop.f32.mrb[6].mxu1 }
 0x716   :  { %v717_v42 = vmul.f32 %v715_v37, %v711_v40  ;;  %v1309_v44 = vpop.f32.mrb[7].mxu1 }
 0x718   :  { %v719_v45 = vadd.f32 %v718_v41, %v717_v42 }
 0x71a   :  { %v720_v47 = vsel %vm82_vm1, %v719_v45, 0.0 }
 0x71b   :  { %721 = vadd.xlane.f32.xlu0 %v720_v47 }
 0x7a8   :  { %v722_v2 = vpop.xlane.xlu0 %721 }
 0x7a9   :  { %1585 = vrcp.f32 %v722_v2 }
 0x7b3   :  { %v1586_v59 = vpop.eup %1585 }
 0x7b4   :  { %v724_v6 = vmul.f32 %v1586_v59, %v719_v45 }
 0x7b6   :  { %v744_v19 = vrot.slane %v724_v6, 1 }
 0x7b8   :  { %v758_v21 = vsel %vm757_vm7, %v756_v35, %v744_v19 }
 0x7b9   :  { %1343 = vmatmul.mubr.f32.vlgmr.msra.gmra.mrb[8].mxu0 %v758_v21  ;;  %759 = vst [vmem:[#allocation8] sm:$0xff] %v758_v21 }
 0x7ba   :  { %1664 = shalt.err (!%p1661_p0)
}
 0x7bb   :  { %s1665_s15 = scalar_lea.hbm %s2082_s5, 128 }
 0x7bc   :  { %p1666_p1 = scmp.ne.s32.totalorder %s2082_s5, %s1665_s15  ;;  %p1669_p2 = scmp.lt.u32.totalorder %s1665_s15, %s2082_s5 }
 0x7be   :  { %p1671_p3 = pnand %p1669_p2, %p1666_p1 }
 0x7c0   :  { %1674 = shalt.err (!%p1671_p3)
}
 0x7c1   :  { %856 = dma.vmem_to_hbm [thread:$0]  %s854_s11, 128, %s2082_s5, [#allocation4]  }
 0x7c2   :  { %s1714_s1 = smov [#allocation9]  }
 0x7c3   :  { %s863_s22 = sshll.u32 %s1714_s1, 4  ;;  %s864_s22 = int_to_ptr.vmem [resolvable:$true] %s863_s22 }
 0x7c4   :  { %s1675_s23 = scalar_lea.vmem %s864_s22, 128  ;;  %p1680_p5 = scmp.lt.s32.totalorder %s864_s22, %s864_s22 }
 0x7c5   :  { %p1676_p4 = scmp.ne.s32.totalorder %s864_s22, %s1675_s23  ;;  %p1681_p6 = scmp.lt.s32.totalorder %s1675_s23, %s1675_s23 }
 0x7c7   :  { %p1682_p7 = por %p1681_p6, %p1680_p5 }
 0x7c9   :  { %p1683_p8 = pnand %p1682_p7, %p1676_p4 }
 0x88c   :  { %v842_v22 = vpop.f32.mrb[8].mxu0 }
 0x88d   :  { %846 = vst [vmem:[#allocation9] sm:$0xff] %v842_v22  ;;  %v1344_v23 = vpop.f32.mrb[9].mxu0 }
 0x88e   :  { %1686 = shalt.err (!%p1683_p8)
}
 0x88f   :  { %s1687_s26 = scalar_lea.hbm %s2083_s6, 128 }
 0x890   :  { %p1688_p9 = scmp.ne.s32.totalorder %s2083_s6, %s1687_s26  ;;  %p1691_p10 = scmp.lt.u32.totalorder %s1687_s26, %s2083_s6 }
 0x892   :  { %p1693_p11 = pnand %p1691_p10, %p1688_p9 }
 0x894   :  { %1696 = shalt.err (!%p1693_p11)
}
 0x895   :  { %866 = dma.vmem_to_hbm [thread:$0]  %s864_s22, 128, %s2083_s6, [#allocation10]  }
 0x896   :  { %1701 = dma.done.wait [#allocation4], 128  }
 0x897   :  { %1702 = vsyncadd [#allocation4], 4294967168 }
 0x898   :  { %1703 = dma.done.wait [#allocation10], 128  }
 0x899   :  { %1704 = vsyncadd [#allocation10], 4294967168 }
 0x89a   :  { %873 = vsyncpa [#allocation3], 1 }
 0x89b   :  { %874 = vsyncpa [#allocation6], 1 }
 0x89c   :  { %875 = vsyncpa [#allocation4], 1 }
 0x89d   :  { %876 = vsyncpa [#allocation10], 1 }

</bundles_post_ra>
